<compile_context>
chip_gen: v5e
topology: v5e:2x2
jax: 0.10.0
libtpu: 0.0.40
codegen_flags: <defaults>
</compile_context>

<pallas_src>
import functools

import jax
import jax.numpy as jnp
from jax.experimental import pallas as pl
from jax.experimental.pallas import tpu as pltpu

# 1024 rows * 512 lanes * 4 B = 2 MiB per feats buffer (4 MiB double-buffered):
# safe on v5e's 16 MiB default scoped VMEM and v7x's 64 MiB physical VMEM.
_MAX_TILE_N = 1024

_COMPILER_PARAMS = pltpu.CompilerParams(
    dimension_semantics=("arbitrary",),   # the grid axis is a reduction over N
)


# ----------------------------------------------------------------------------
# Streaming kernel: max / average aggregation -> Linear -> Softmax
# ----------------------------------------------------------------------------
def _mil_pool_kernel(feats_ref, wc_ref, bc_ref, score_ref, acc_ref,
                     *, n_rows, use_max):
    i = pl.program_id(0)
    tile_n = feats_ref.shape[0]

    @pl.when(i == 0)
    def _():
        if use_max:
            acc_ref[...] = jnp.full(acc_ref.shape, -jnp.inf, acc_ref.dtype)
        else:
            acc_ref[...] = jnp.zeros(acc_ref.shape, acc_ref.dtype)

    # Mask the ragged last tile (padded rows hold undefined VMEM data).
    row = i * tile_n + jax.lax.broadcasted_iota(jnp.int32, (tile_n, 1), 0)
    valid = row < n_rows                                     # (tile_n, 1)

    x = feats_ref[...]                                       # (tile_n, F) f32
    if use_max:
        x = jnp.where(valid, x, -jnp.inf)
        acc_ref[...] = jnp.maximum(acc_ref[...],
                                   jnp.max(x, axis=0, keepdims=True))
    else:
        x = jnp.where(valid, x, 0.0)
        acc_ref[...] = acc_ref[...] + jnp.sum(x, axis=0, keepdims=True)

    @pl.when(i == pl.num_programs(0) - 1)
    def _():
        emb = acc_ref[...]                                   # (1, F)
        if not use_max:
            emb = emb * (1.0 / n_rows)                       # true N (static)
        # Classifier Linear(F, nClasses) as broadcast-multiply + lane reduce
        # (w_cls passed transposed, (nC, F)) -> (nC, 1) logits; no 1x4 MXU tile.
        logits = jnp.sum(emb * wc_ref[...], axis=-1, keepdims=True) + bc_ref[...]
        mx = jnp.max(logits, axis=0, keepdims=True)
        e = jnp.exp(logits - mx)
        score_ref[...] = (e / jnp.sum(e, axis=0, keepdims=True)
                          ).astype(score_ref.dtype)


# ----------------------------------------------------------------------------
# Streaming kernel: gated attention aggregation (online softmax over instances)
#                   -> Linear -> Softmax
# ----------------------------------------------------------------------------
def _mil_attention_kernel(feats_ref, wvu_ref, bvu_ref, ww_ref, wc_ref, bc_ref,
                          score_ref, m_ref, l_ref, acc_ref, *, n_rows, d):
    i = pl.program_id(0)
    tile_n = feats_ref.shape[0]

    @pl.when(i == 0)
    def _():
        m_ref[...] = jnp.full(m_ref.shape, -jnp.inf, m_ref.dtype)
        l_ref[...] = jnp.zeros(l_ref.shape, l_ref.dtype)
        acc_ref[...] = jnp.zeros(acc_ref.shape, acc_ref.dtype)

    # Validity mask for the ragged last tile.
    row = i * tile_n + jax.lax.broadcasted_iota(jnp.int32, (tile_n, 1), 0)
    valid = row < n_rows                                     # (tile_n, 1)

    # Zero padded rows so undefined VMEM data (possibly NaN/Inf) never reaches
    # the weighted sum; their attention logits are forced to -inf below.
    x = jnp.where(valid, feats_ref[...], 0.0)                # (tile_n, L) f32

    # Fused gating projection: one 256-wide MXU pass, bf16 in / f32 accumulate.
    z = jnp.dot(x.astype(jnp.bfloat16), wvu_ref[...],
                preferred_element_type=jnp.float32) + bvu_ref[...]   # (tile_n, 2D)
    a_v = jnp.tanh(z[:, :d])
    a_u = pl.reciprocal(1.0 + jnp.exp(-z[:, d:]), approx=True)       # sigmoid
    gated = a_v * a_u                                        # (tile_n, D) f32

    # attention_weights: Linear(D, 1) as broadcast-multiply + lane reduction.
    # (bias b_w dropped: softmax over instances is shift-invariant.)
    s = jnp.sum(gated * ww_ref[...], axis=-1, keepdims=True)          # (tile_n, 1)
    s = jnp.where(valid, s, -jnp.inf)

    # Online softmax over the instance axis (flash-style running m, l, acc).
    m_prev = m_ref[...]                                      # (1, 1)
    m_new = jnp.maximum(m_prev, jnp.max(s, axis=0, keepdims=True))
    alpha = jnp.exp(m_prev - m_new)
    p = jnp.exp(s - m_new)                                   # 0 on padded rows
    l_ref[...] = alpha * l_ref[...] + jnp.sum(p, axis=0, keepdims=True)
    acc_ref[...] = alpha * acc_ref[...] + jnp.sum(p * x, axis=0, keepdims=True)
    m_ref[...] = m_new

    @pl.when(i == pl.num_programs(0) - 1)
    def _():
        # embedding = feats^T @ softmax(s)  ==  acc / l   (1, L)
        emb = acc_ref[...] * pl.reciprocal(l_ref[...], approx=True)
        # Classifier as VPU reduce against transposed weights (nC, L).
        logits = jnp.sum(emb * wc_ref[...], axis=-1, keepdims=True) + bc_ref[...]
        mx = jnp.max(logits, axis=0, keepdims=True)
        e = jnp.exp(logits - mx)
        score_ref[...] = (e / jnp.sum(e, axis=0, keepdims=True)
                          ).astype(score_ref.dtype)


# ----------------------------------------------------------------------------
# Wrapper
# ----------------------------------------------------------------------------
def _auto_tile_n(n, tile_n):
    if tile_n is None:
        tile_n = min(n, _MAX_TILE_N)
    tile_n = min(tile_n, max(n, 8))
    return max(8, ((tile_n + 7) // 8) * 8)     # sublane-multiple block rows


def mil_embedding_forward(feats, params, aggregation='max', tile_n=None):
    feats = feats.astype(jnp.float32)
    n, f = feats.shape

    w_cls_t = params['w_cls'].T                # (nC, F)  -> lane-reduce layout
    b_cls_t = params['b_cls'].T                # (nC, 1)
    n_classes = w_cls_t.shape[0]

    tile_n = _auto_tile_n(n, tile_n)
    grid = (pl.cdiv(n, tile_n),)

    out_shape = jax.ShapeDtypeStruct((n_classes, 1), jnp.float32)
    feats_spec = pl.BlockSpec((tile_n, f), lambda i: (i, 0))

    def full(shape):
        # loop-invariant weight: same block for every grid step -> fetched once
        return pl.BlockSpec(tuple(shape), lambda i: (0, 0))

    if aggregation in ('max', 'average'):
        kernel = functools.partial(_mil_pool_kernel, n_rows=n,
                                   use_max=(aggregation == 'max'))
        score = pl.pallas_call(
            kernel,
            out_shape=out_shape,
            grid_spec=pltpu.PrefetchScalarGridSpec(
                num_scalar_prefetch=0,
                grid=grid,
                in_specs=[feats_spec, full(w_cls_t.shape), full(b_cls_t.shape)],
                out_specs=full((n_classes, 1)),
                scratch_shapes=[pltpu.VMEM((1, f), jnp.float32)],
            ),
            compiler_params=_COMPILER_PARAMS,
        )(feats, w_cls_t, b_cls_t)

    elif aggregation == 'attention':
        d = params['w_v'].shape[1]
        # Fuse the two gating projections into one (L, 2D) weight; bf16 inputs,
        # f32 accumulation (bias added in f32 after the MXU).
        w_vu = jnp.concatenate([params['w_v'], params['w_u']],
                               axis=1).astype(jnp.bfloat16)          # (L, 2D)
        b_vu = jnp.concatenate([params['b_v'], params['b_u']], axis=1)  # (1, 2D)
        w_w = params['w_w']                                          # (1, D)

        kernel = functools.partial(_mil_attention_kernel, n_rows=n, d=d)
        score = pl.pallas_call(
            kernel,
            out_shape=out_shape,
            grid_spec=pltpu.PrefetchScalarGridSpec(
                num_scalar_prefetch=0,
                grid=grid,
                in_specs=[feats_spec,
                          full(w_vu.shape), full(b_vu.shape), full(w_w.shape),
                          full(w_cls_t.shape), full(b_cls_t.shape)],
                out_specs=full((n_classes, 1)),
                scratch_shapes=[pltpu.VMEM((1, 1), jnp.float32),   # running max m
                                pltpu.VMEM((1, 1), jnp.float32),   # running sum l
                                pltpu.VMEM((1, f), jnp.float32)],  # weighted-sum acc
            ),
            compiler_params=_COMPILER_PARAMS,
        )(feats, w_vu, b_vu, w_w, w_cls_t, b_cls_t)
    else:
        raise ValueError(f"unknown aggregation: {aggregation}")

    return score[:, 0]                                       # (n_classes,)


# ----------------------------------------------------------------------------
# Deterministic parameter init (PyTorch Linear default: U(-1/sqrt(fan_in), +))
# ----------------------------------------------------------------------------
def _linear_init(key, fan_in, fan_out):
    kw, kb = jax.random.split(key)
    bound = float(fan_in) ** -0.5
    w = jax.random.uniform(kw, (fan_in, fan_out), jnp.float32, -bound, bound)
    b = jax.random.uniform(kb, (1, fan_out), jnp.float32, -bound, bound)
    return w, b


def init_mil_params(key, aggregation='max', feat_dim=128, n_classes=4):
    params = {}
    if aggregation == 'attention':
        L, D = 512, 128
        k1, k2, k3, k4 = jax.random.split(key, 4)
        params['w_v'], params['b_v'] = _linear_init(k1, L, D)
        params['w_u'], params['b_u'] = _linear_init(k2, L, D)
        w_w, b_w = _linear_init(k3, D, 1)
        params['w_w'] = w_w.T                              # (1, D)
        params['b_w'] = b_w                                # (1, 1) (softmax no-op)
        # TODO(synk): original code builds Linear(D=128, nClasses) here, which
        # cannot consume the 512-dim attention embedding; we use Linear(L, nClasses).
        params['w_cls'], params['b_cls'] = _linear_init(k4, L, n_classes)
    else:
        params['w_cls'], params['b_cls'] = _linear_init(key, feat_dim, n_classes)
    return params


# ----------------------------------------------------------------------------
# Pure-JAX reference (for correctness check)
# ----------------------------------------------------------------------------
def mil_embedding_reference(feats, params, aggregation='max'):
    if aggregation == 'max':
        emb = jnp.max(feats, axis=0)
    elif aggregation == 'average':
        emb = jnp.mean(feats, axis=0)
    else:
        a_v = jnp.tanh(feats @ params['w_v'] + params['b_v'])
        a_u = jax.nn.sigmoid(feats @ params['w_u'] + params['b_u'])
        s = jnp.sum(a_v * a_u * params['w_w'], axis=-1, keepdims=True) + params['b_w']
        w = jax.nn.softmax(s, axis=0)                      # (N, 1)
        emb = (feats.T @ w)[:, 0]                          # (L,)
    logits = emb @ params['w_cls'] + params['b_cls'][0]
    return jax.nn.softmax(logits)


if __name__ == "__main__":
    key = jax.random.PRNGKey(0)
    k_fm, k_fa, k_pm, k_pa = jax.random.split(key, 4)

    n_classes = 4

    # max/average config: feat_dim=128, 50 instances (small).
    feat_dim, n_pool = 128, 50
    feats_md = jax.random.normal(k_fm, (n_pool, feat_dim), jnp.float32)
    params_md = init_mil_params(k_pm, 'max', feat_dim=feat_dim,
                                n_classes=n_classes)

    # attention config: L=512, D=128, K=1, 30 instances (small).
    feats_att = jax.random.normal(k_fa, (30, 512), jnp.float32)
    params_att = init_mil_params(k_pa, 'attention', n_classes=n_classes)

    # Run each mode with the default tile (single ragged tile) AND a small
    # explicit tile (multi-tile streaming path with a ragged last tile).
    results = []
    for agg, feats, params in (('max', feats_md, params_md),
                               ('average', feats_md, params_md),
                               ('attention', feats_att, params_att)):
        for tn in (None, 16):
            score = mil_embedding_forward(feats, params, agg, tile_n=tn)
            results.append((agg, tn, score, feats, params))

    jax.block_until_ready([r[2] for r in results])

    for agg, tn, score, feats, params in results:
        ref = mil_embedding_reference(feats, params, agg)
        assert score.shape == (n_classes,), (agg, tn, score.shape)
        assert bool(jnp.all(jnp.isfinite(score))), (agg, tn)
        assert bool(jnp.allclose(jnp.sum(score), 1.0, atol=1e-5)), (agg, tn)
        # bf16 MXU inputs on the gating path -> slightly looser than pure-f32.
        assert bool(jnp.allclose(score, ref, atol=5e-3, rtol=1e-2)), \
            (agg, tn, score, ref)

    print("KERNEL_OK")
</pallas_src>

<mosaic_0001>
module attributes {stable_mosaic.version = 11 : i64} {
  func.func @_mil_pool_kernel(%arg0: i32, %arg1: memref<56x128xf32, #tpu.memory_space<vmem>>, %arg2: memref<4x128xf32, #tpu.memory_space<vmem>>, %arg3: memref<4x1xf32, #tpu.memory_space<vmem>>, %arg4: memref<4x1xf32, #tpu.memory_space<vmem>>, %arg5: memref<1x128xf32, #tpu.memory_space<vmem>>) attributes {dimension_semantics = [#tpu.dimension_semantics<arbitrary>], iteration_bounds = array<i64: 1>, scalar_prefetch = 0 : i64, scratch_operands = 1 : i64, tpu.core_type = #tpu.core_type<tc>, window_params = [{transform_indices = @transform_0, window_bounds = array<i64: 56, 128>}, {pipeline_mode = #tpu.pipeline_mode<synchronous>, transform_indices = @transform_1, window_bounds = array<i64: 4, 128>}, {pipeline_mode = #tpu.pipeline_mode<synchronous>, transform_indices = @transform_2, window_bounds = array<i64: 4, 1>}, {pipeline_mode = #tpu.pipeline_mode<synchronous>, transform_indices = @transform_3, window_bounds = array<i64: 4, 1>}]} {
    %c0_i32 = arith.constant 0 : i32
    %0 = arith.cmpi eq, %arg0, %c0_i32 : i32
    %1 = arith.extui %0 : i1 to i32
    %c0_i32_0 = arith.constant 0 : i32
    %2 = arith.cmpi ne, %1, %c0_i32_0 : i32
    scf.if %2 {
      %cst_9 = arith.constant 0xFF800000 : f32
      %22 = vector.broadcast %cst_9 : f32 to vector<1x128xf32>
      %c0_10 = arith.constant 0 : index
      %c0_11 = arith.constant 0 : index
      %23 = vector.load %arg5[%c0_10, %c0_11] : memref<1x128xf32, #tpu.memory_space<vmem>>, vector<1x128xf32>
      tpu.vector_store %arg5[%c0_10, %c0_11], %22 {strides = array<i32>} : memref<1x128xf32, #tpu.memory_space<vmem>>, vector<1x128xf32>,
    } else {
    }
    %c56_i32 = arith.constant 56 : i32
    %3 = arith.muli %arg0, %c56_i32 : i32
    %4 = tpu.iota {dimensions = array<i32: 0>} : vector<56x1xi32>
    %5 = vector.broadcast %3 : i32 to vector<56x1xi32>
    %6 = arith.addi %5, %4 : vector<56x1xi32>
    %c50_i32 = arith.constant 50 : i32
    %7 = vector.broadcast %c50_i32 : i32 to vector<56x1xi32>
    %8 = arith.cmpi slt, %6, %7 : vector<56x1xi32>
    %c0 = arith.constant 0 : index
    %c0_1 = arith.constant 0 : index
    %9 = vector.load %arg1[%c0, %c0_1] : memref<56x128xf32, #tpu.memory_space<vmem>>, vector<56x128xf32>
    %cst = arith.constant 0xFF800000 : f32
    %10 = vector.shape_cast %8 : vector<56x1xi1> to vector<56x1xi1>
    %11 = vector.broadcast %10 : vector<56x1xi1> to vector<56x128xi1>
    %12 = vector.broadcast %cst : f32 to vector<56x128xf32>
    %13 = arith.select %11, %9, %12 : vector<56x128xi1>, vector<56x128xf32>
    %c0_2 = arith.constant 0 : index
    %c0_3 = arith.constant 0 : index
    %14 = vector.load %arg5[%c0_2, %c0_3] : memref<1x128xf32, #tpu.memory_space<vmem>>, vector<1x128xf32>
    %cst_4 = arith.constant dense<0xFF800000> : vector<128xf32>
    %15 = vector.multi_reduction <maximumf>, %13, %cst_4 [0] : vector<56x128xf32> to vector<128xf32>
    %16 = vector.shape_cast %15 : vector<128xf32> to vector<1x128xf32>
    %17 = arith.maximumf %14, %16 : vector<1x128xf32>
    %c0_5 = arith.constant 0 : index
    %c0_6 = arith.constant 0 : index
    %18 = vector.load %arg5[%c0_5, %c0_6] : memref<1x128xf32, #tpu.memory_space<vmem>>, vector<1x128xf32>
    tpu.vector_store %arg5[%c0_5, %c0_6], %17 {strides = array<i32>} : memref<1x128xf32, #tpu.memory_space<vmem>>, vector<1x128xf32>,
    %c0_i32_7 = arith.constant 0 : i32
    %19 = arith.cmpi eq, %arg0, %c0_i32_7 : i32
    %20 = arith.extui %19 : i1 to i32
    %c0_i32_8 = arith.constant 0 : i32
    %21 = arith.cmpi ne, %20, %c0_i32_8 : i32
    scf.if %21 {
      %c0_9 = arith.constant 0 : index
      %c0_10 = arith.constant 0 : index
      %22 = vector.load %arg5[%c0_9, %c0_10] : memref<1x128xf32, #tpu.memory_space<vmem>>, vector<1x128xf32>
      %c0_11 = arith.constant 0 : index
      %c0_12 = arith.constant 0 : index
      %23 = vector.load %arg2[%c0_11, %c0_12] : memref<4x128xf32, #tpu.memory_space<vmem>>, vector<4x128xf32>
      %24 = vector.broadcast %22 : vector<1x128xf32> to vector<4x128xf32>
      %25 = arith.mulf %24, %23 : vector<4x128xf32>
      %cst_13 = arith.constant dense<0.000000e+00> : vector<4xf32>
      %26 = vector.multi_reduction <add>, %25, %cst_13 [1] : vector<4x128xf32> to vector<4xf32>
      %27 = vector.shape_cast %26 : vector<4xf32> to vector<4x1xf32>
      %c0_14 = arith.constant 0 : index
      %c0_15 = arith.constant 0 : index
      %28 = vector.load %arg3[%c0_14, %c0_15] : memref<4x1xf32, #tpu.memory_space<vmem>>, vector<4x1xf32>
      %29 = arith.addf %27, %28 : vector<4x1xf32>
      %cst_16 = arith.constant dense<0xFF800000> : vector<1xf32>
      %30 = vector.multi_reduction <maximumf>, %29, %cst_16 [0] : vector<4x1xf32> to vector<1xf32>
      %31 = vector.shape_cast %30 : vector<1xf32> to vector<1x1xf32>
      %32 = vector.broadcast %31 : vector<1x1xf32> to vector<4x1xf32>
      %33 = arith.subf %29, %32 : vector<4x1xf32>
      %34 = math.exp %33 : vector<4x1xf32>
      %cst_17 = arith.constant dense<0.000000e+00> : vector<1xf32>
      %35 = vector.multi_reduction <add>, %34, %cst_17 [0] : vector<4x1xf32> to vector<1xf32>
      %36 = vector.shape_cast %35 : vector<1xf32> to vector<1x1xf32>
      %37 = vector.broadcast %36 : vector<1x1xf32> to vector<4x1xf32>
      %38 = arith.divf %34, %37 : vector<4x1xf32>
      %c0_18 = arith.constant 0 : index
      %c0_19 = arith.constant 0 : index
      %39 = vector.load %arg4[%c0_18, %c0_19] : memref<4x1xf32, #tpu.memory_space<vmem>>, vector<4x1xf32>
      tpu.vector_store %arg4[%c0_18, %c0_19], %38 {strides = array<i32>} : memref<4x1xf32, #tpu.memory_space<vmem>>, vector<4x1xf32>,
    } else {
    }
    return
  }
  func.func @transform_0(%arg0: i32) -> (i32, i32) {
    %c0_i32 = arith.constant 0 : i32
    %c0_i32_0 = arith.constant 0 : i32
    return %arg0, %c0_i32 : i32, i32
  }
  func.func @transform_1(%arg0: i32) -> (i32, i32) {
    %c0_i32 = arith.constant 0 : i32
    %c0_i32_0 = arith.constant 0 : i32
    %c0_i32_1 = arith.constant 0 : i32
    return %c0_i32, %c0_i32_0 : i32, i32
  }
  func.func @transform_2(%arg0: i32) -> (i32, i32) {
    %c0_i32 = arith.constant 0 : i32
    %c0_i32_0 = arith.constant 0 : i32
    %c0_i32_1 = arith.constant 0 : i32
    return %c0_i32, %c0_i32_0 : i32, i32
  }
  func.func @transform_3(%arg0: i32) -> (i32, i32) {
    %c0_i32 = arith.constant 0 : i32
    %c0_i32_0 = arith.constant 0 : i32
    %c0_i32_1 = arith.constant 0 : i32
    return %c0_i32, %c0_i32_0 : i32, i32
  }
}

</mosaic_0001>

<bundles_post_ra>
// kernel: tpu_custom_call.1
= control target key start
LH: loop header
LB: loop body
LE: loop exit
PB: predicated region body
PF: predicated region fallthrough
CT: control target
= control target key end

     0   :  { %8 = vsyncpa [#allocation4], 0  ;;  %s191_s15 = smov [#allocation3]   ;;  %s192_s17 = smov 128   ;;  %s230_s0 = inlined_call_operand.hbm [shape: f32[50,128], index: 0, kind: input, shape index: {}]   ;;  %s231_s1 = inlined_call_operand.vmem [shape: f32[4,128], index: 1, kind: input, shape index: {}]   ;;  %s232_s2 = inlined_call_operand.vmem [shape: f32[4,1], index: 2, kind: input, shape index: {}]   ;;  %s233_s3 = inlined_call_operand.vmem [shape: f32[4,1], index: 3, kind: output, shape index: {}]  }
   0x1   :  { %s13_s14 = sshll.u32 %s230_s0, 4  ;;  %s15_s16 = sshll.u32 %s191_s15, 4  ;;  %s14_s14 = int_to_ptr.hbm [resolvable:$true] %s13_s14  ;;  %s16_s16 = int_to_ptr.vmem [resolvable:$true] %s15_s16 }
   0x2   :  { %s193_s18 = smov 8  }
   0x3   :  { %21 = dma.hbm_to_vmem [thread:$0]  %s14_s14, 896, %s16_s16, [#allocation4], %s192_s17, %s192_s17, %s193_s18  }
   0x4   :  { %189 = dma.done.wait [#allocation4], 896  }
   0x5   :  { %190 = vsyncadd [#allocation4], 4294966400  ;;  %v36_v0 = vlaneseq  ;;  %v194_v1 = vmov -inf   ;;  %v59_v4 = vld [vmem:[#allocation3] sm:$0xff]  ;;  %v60_v5 = vld [vmem:[#allocation3 + $0x8] sm:$0xff]  ;;  %vm111_vm1 = vcmask 1043456  }
   0x6   :  { %34 = vst [vmem:[#allocation2] sm:$0x1] %v194_v1  ;;  %v61_v6 = vld [vmem:[#allocation3 + $0x10] sm:$0xff]  ;;  %v63_v7 = vld [vmem:[#allocation3 + $0x20] sm:$0xff]  ;;  %v64_v8 = vld [vmem:[#allocation3 + $0x28] sm:$0xff]  ;;  %vm117_vm2 = vcmask 3072  }
   0x7   :  { %v37_v2 = vshrl.u32 %v36_v0, 7  ;;  %v65_v9 = vld [vmem:[#allocation3 + $0x30] sm:$0xff]  ;;  %v88_v10 = vmax.f32 %v59_v4, %v63_v7  ;;  %v89_v11 = vmax.f32 %v60_v5, %v64_v8  ;;  %v62_v12 = vld [vmem:[#allocation3 + $0x18] sm:$0xff] }
   0x8   :  { %v106_v26 = vld [vmem:[%s231_s1] sm:$0xf] }
   0x9   :  { %v43_v3 = vadd.s32 48, %v37_v2  ;;  %v91_v15 = vmax.f32 %v88_v10, %v89_v11  ;;  %v115_v30 = vld [vmem:[%s232_s2] sm:$0xf] }
   0xb   :  { %vm58_vm0 = vcmp.lt.s32.totalorder %v43_v3, 50 }
   0xc   :  { %v86_v13 = vsel %vm58_vm0, %v65_v9, -inf }
   0xd   :  { %v90_v14 = vmax.f32 %v61_v6, %v86_v13  ;;  %v87_v23 = vld [vmem:[#allocation2] sm:$0x1] }
   0xf   :  { %v92_v16 = vmax.f32 %v90_v14, %v62_v12 }
  0x11   :  { %v93_v17 = vmax.f32 %v91_v15, %v92_v16 }
  0x13   :  { %v94_v18 = vrot.slane %v93_v17, 4 }
  0x15   :  { %v95_v19 = vmax.f32 %v93_v17, %v94_v18 }
  0x17   :  { %v96_v20 = vrot.slane %v95_v19, 2 }
  0x19   :  { %v97_v21 = vmax.f32 %v95_v19, %v96_v20 }
  0x1b   :  { %v98_v22 = vrot.slane %v97_v21, 1 }
  0x1d   :  { %v99_v24 = vmax.f32 %v97_v21, %v98_v22 }
  0x1f   :  { %v100_v25 = vmax.f32 %v87_v23, %v99_v24 }
  0x21   :  { %101 = vst [vmem:[#allocation2] sm:$0x1] %v100_v25 }
  0x28   :  { %v160_v27 = vld [vmem:[#allocation2] ss:$0 sm:$0xff] }
  0x29   :  { %v110_v28 = vmul.f32 %v160_v27, %v106_v26 }
  0x2b   :  { %v112_v29 = vsel %vm111_vm1, %v110_v28, 0.0 }
  0x2c   :  { %113 = vadd.xlane.f32.xlu0 %v112_v29 }
  0x9f   :  { %v114_v31 = vpop.xlane.xlu0 %113 }
  0xa0   :  { %v116_v32 = vadd.f32 %v115_v30, %v114_v31 }
  0xa2   :  { %v118_v33 = vsel %vm117_vm2, %v116_v32, -inf }
  0xa3   :  { %v119_v34 = vrot.slane %v118_v33, 4 }
  0xa5   :  { %v120_v35 = vmax.f32 %v118_v33, %v119_v34 }
  0xa7   :  { %v121_v36 = vrot.slane %v120_v35, 2 }
  0xa9   :  { %v122_v37 = vmax.f32 %v120_v35, %v121_v36 }
  0xab   :  { %v123_v38 = vrot.slane %v122_v37, 1 }
  0xad   :  { %v124_v39 = vmax.f32 %v122_v37, %v123_v38 }
  0xaf   :  { %v125_v40 = vsub.f32 %v116_v32, %v124_v39 }
  0xb1   :  { %v126_v41 = vmul.f32 1.442695, %v125_v40 }
  0xb3   :  { %161 = vpow2.f32 %v126_v41 }
  0xb9   :  { %v162_v42 = vpop.eup %161 }
  0xba   :  { %v128_v43 = vsel %vm117_vm2, %v162_v42, 0.0 }
  0xbb   :  { %v129_v44 = vrot.slane %v128_v43, 4 }
  0xbd   :  { %v130_v45 = vadd.f32 %v129_v44, %v128_v43 }
  0xbf   :  { %v131_v46 = vrot.slane %v130_v45, 2 }
  0xc1   :  { %v132_v47 = vadd.f32 %v131_v46, %v130_v45 }
  0xc3   :  { %v133_v48 = vrot.slane %v132_v47, 1 }
  0xc5   :  { %v134_v49 = vadd.f32 %v133_v48, %v132_v47 }
  0xc7   :  { %163 = vrcp.f32 %v134_v49  ;;  %v146_v53 = vand.u32 2147483648, %v134_v49  ;;  %v144_v55 = vand.u32 2147483647, %v134_v49  ;;  %vm140_vm4 = vweird.f32 %v134_v49 }
  0xc9   :  { %v147_v57 = vor.u32 1.1754944e-38, %v146_v53  ;;  %vm145_vm6 = vcmp.eq.f32.partialorder %v144_v55, 8.507059e+37 }
  0xcd   :  { %v164_v50 = vpop.eup %163 }
  0xce   :  { %v136_v51 = vmul.f32 %v164_v50, %v134_v49  ;;  %vm141_vm3 = vweird.f32 %v164_v50 }
  0xcf   :  { %vm142_vm5 = vmor %vm140_vm4, %vm141_vm3 }
  0xd0   :  { %v137_v52 = vsub.f32 1.0, %v136_v51 }
  0xd2   :  { %v138_v54 = vmul.f32 %v164_v50, %v137_v52 }
  0xd4   :  { %v139_v56 = vadd.f32 %v164_v50, %v138_v54 }
  0xd6   :  { %v143_v58 = vsel %vm142_vm5, %v164_v50, %v139_v56 }
  0xd7   :  { %v148_v59 = vsel %vm145_vm6, %v147_v57, %v143_v58 }
  0xd8   :  { %v149_v60 = vmul.f32 %v162_v42, %v148_v59 }
  0xda   :  { %150 = vst.msk [vmem:[%s233_s3] sm:$0xf] %vm117_vm2, %v149_v60 }
  0xdb   :  { %155 = vsyncpa [#allocation4], 1 }

</bundles_post_ra>
